<compile_context>
chip_gen: v5e
topology: v5e:2x2
jax: 0.10.0
libtpu: 0.0.40
codegen_flags: <defaults>
</compile_context>

<pallas_src>
import functools

import numpy as np
import jax
import jax.numpy as jnp
from jax import lax
from jax.experimental import pallas as pl
from jax.experimental.pallas import tpu as pltpu

C_PACK = 32          # per-tap channel block (= inner_channels)
LANE = 128           # lane width; spatial dims are padded to a multiple of this
NEG_INF = -1e30


# --------------------------- static architecture ----------------------------

def _encoder_config():
    """Mirror of CTCDecoder._init_encoder (kernel / stride / padding per stage)."""
    return (
        dict(kind="conv", ksize=(3, 3), stride=(1, 1), padding=(1, 1)),
        dict(kind="conv", ksize=(3, 3), stride=(1, 1), padding=(1, 1)),
        dict(kind="pool", window=(2, 2), stride=(2, 2)),
        dict(kind="conv", ksize=(3, 3), stride=(1, 1), padding=(1, 1)),
        dict(kind="conv", ksize=(3, 3), stride=(1, 1), padding=(1, 1)),
        dict(kind="pool", window=(2, 1), stride=(2, 1)),
        dict(kind="conv", ksize=(3, 3), stride=(1, 1), padding=(1, 1)),
        dict(kind="conv", ksize=(3, 3), stride=(1, 1), padding=(1, 1)),
        dict(kind="pool", window=(2, 1), stride=(2, 1)),
        dict(kind="conv", ksize=(2, 3), stride=(2, 1), padding=(0, 1)),
    )


def _round_up(n, m):
    return ((n + m - 1) // m) * m


def _phys(s):
    """Physical (padded) lane extent for a logical spatial size s."""
    return max(LANE, _round_up(s, LANE))


# ---------------- shifts / masks / decimation (built once in numpy) ----------

def _conv_shifts_masks(h, w, kh, kw, ph, pw, s_phys):
    """Per-tap lane shift (flat index offset) + 0/1 validity mask ('same' pad)."""
    ntaps = kh * kw
    shifts = []
    mask = np.zeros((ntaps, s_phys), np.float32)
    for i in range(kh):
        for j in range(kw):
            t = i * kw + j
            shifts.append((i - ph) * w + (j - pw))
            for hh in range(h):
                for ww in range(w):
                    if 0 <= hh + i - ph < h and 0 <= ww + j - pw < w:
                        mask[t, hh * w + ww] = 1.0
    return tuple(shifts), mask


def _pool_shifts(kh, kw, w):
    return tuple(i * w + j for i in range(kh) for j in range(kw))


def _decim_matrix(h, w, ho, wo, sh, sw, sp_in, sp_out):
    """0/1 matrix picking the strided anchor positions (full grid -> out grid)."""
    d = np.zeros((sp_in, sp_out), np.float32)
    for hh in range(ho):
        for ww in range(wo):
            src_h, src_w = hh * sh, ww * sw
            assert src_h < h and src_w < w, "decimation anchor outside input grid"
            d[src_h * w + src_w, hh * wo + ww] = 1.0
    return d


# ------------------------------ fused kernel --------------------------------

def _fused_ctc_kernel(*refs, plan, n_masks, num_classes, roll_sign):
    """Whole CTCDecoder inference forward for one batch image, fully in VMEM.

    refs = (x, wenc, benc, wpred, bpred, masks..., decims..., out, g_scratch)
      x      : (1, 32, SP0) bf16      channels on sublanes, flat spatial on lanes
      wenc   : (n_conv, 32, K_MAX) bf16   per-layer stacked (taps x 32ch) weights
      benc   : (32, n_conv) f32           per-layer bias columns (BN folded)
      wpred  : (CLS_PAD, 32) bf16         1x1 prediction conv weight
      bpred  : (CLS_PAD, 1) f32
      masks_k: (ntaps, sp) f32            conv border masks
      decims_k:(sp_in, sp_out) bf16       0/1 pool / stride decimation
      out    : (1, CLS_PAD, SP_OUT) f32   softmax probabilities
      g_scratch: (K_MAX, SP0) bf16        staged taps for the single per-layer dot
    """
    x_ref, wenc_ref, benc_ref, wpred_ref, bpred_ref = refs[:5]
    mask_refs = refs[5:5 + n_masks]
    decim_refs = refs[5 + n_masks:-2]
    out_ref, g_ref = refs[-2], refs[-1]

    ball = benc_ref[...]                              # (32, n_conv) f32
    x = x_ref[...][0].astype(jnp.float32)             # (32, SP0) f32

    for step in plan:
        if step[0] == "conv":
            _, wl, mi, shifts, kdim, di, sp = step
            masks = mask_refs[mi][...]                # (ntaps, sp) f32
            # Stage rolled + masked taps into the K dimension (XLU + VPU work).
            for t, sig in enumerate(shifts):
                sh = (roll_sign * sig) % sp
                r = x if sh == 0 else pltpu.roll(x, sh, 1)
                g_ref[t * C_PACK:(t + 1) * C_PACK, 0:sp] = (
                    (r * masks[t:t + 1, :]).astype(jnp.bfloat16))
            # Single MXU contraction over K = ntaps*32 (>= 256 for 3x3 layers).
            w = wenc_ref[wl][:, :kdim]                # (32, K) bf16
            g = g_ref[0:kdim, 0:sp]                   # (K, sp) bf16
            acc = jnp.dot(w, g, preferred_element_type=jnp.float32)
            acc = acc + ball[:, wl:wl + 1]            # Conv + BN bias
            x = jnp.maximum(acc, 0.0)                 # ReLU, (32, sp) f32
            if di is not None:                        # strided conv -> decimate
                x = jnp.dot(x.astype(jnp.bfloat16), decim_refs[di][...],
                            preferred_element_type=jnp.float32)
        else:                                         # "pool": rolls + max + decim
            _, shifts, di, sp = step
            best = x
            for sig in shifts:
                sh = (roll_sign * sig) % sp
                if sh == 0:
                    continue
                best = jnp.maximum(best, pltpu.roll(x, sh, 1))
            x = jnp.dot(best.astype(jnp.bfloat16), decim_refs[di][...],
                        preferred_element_type=jnp.float32)

    # 1x1 prediction conv + channel softmax (channels are sublanes here).
    logits = jnp.dot(wpred_ref[...], x.astype(jnp.bfloat16),
                     preferred_element_type=jnp.float32) + bpred_ref[...]
    cls = lax.broadcasted_iota(jnp.int32, logits.shape, 0)
    logits = jnp.where(cls < num_classes, logits, NEG_INF)
    m = jnp.max(logits, axis=0, keepdims=True)
    e = jnp.exp(logits - m)
    s = jnp.sum(e, axis=0, keepdims=True)
    r0 = pl.reciprocal(s, approx=True)                # EUP
    inv = r0 * (2.0 - s * r0)                         # one Newton step
    out_ref[...] = (e * inv).reshape((1,) + logits.shape)


# ----------------------------- parameter handling ---------------------------

def _conv_bn_folded(key, cin, cout, ksize):
    """Conv2d + BatchNorm2d(eval) folded into a single (w, b) pair (HWIO)."""
    kh, kw = ksize
    k1, k2, k3, k4, k5, k6 = jax.random.split(key, 6)
    std = 1.0 / np.sqrt(kh * kw * cin)
    w = jax.random.normal(k1, (kh, kw, cin, cout), jnp.float32) * std
    b = jax.random.normal(k2, (cout,), jnp.float32) * 0.01
    gamma = jax.random.uniform(k3, (cout,), jnp.float32, 0.5, 1.5)
    beta = jax.random.normal(k4, (cout,), jnp.float32) * 0.1
    mean = jax.random.normal(k5, (cout,), jnp.float32) * 0.1
    var = jax.random.uniform(k6, (cout,), jnp.float32, 0.5, 1.5)
    scale = gamma / jnp.sqrt(var + 1e-5)
    return w * scale, (b - mean) * scale + beta


def init_params(key, in_channels, inner_channels, num_classes):
    cfg = _encoder_config()
    n_conv = sum(1 for st in cfg if st["kind"] == "conv")
    keys = jax.random.split(key, n_conv + 2)
    conv_w, conv_b = [], []
    cin = in_channels
    ki = 0
    for st in cfg:
        if st["kind"] == "conv":
            w, b = _conv_bn_folded(keys[ki], cin, inner_channels, st["ksize"])
            ki += 1
            conv_w.append(w)
            conv_b.append(b)
            cin = inner_channels
    std = 1.0 / np.sqrt(inner_channels)
    pred_w = jax.random.normal(keys[-2], (1, 1, inner_channels, num_classes),
                               jnp.float32) * std
    pred_b = jax.random.normal(keys[-1], (num_classes,), jnp.float32) * 0.01
    return dict(conv_w=conv_w, conv_b=conv_b, pred_w=pred_w, pred_b=pred_b)


def _roll_sign():
    """Probe pltpu.roll's shift convention once so kernel shifts are exact."""
    def k(x_ref, o_ref):
        o_ref[...] = pltpu.roll(x_ref[...], 1, 1)
    x = jnp.broadcast_to(jnp.arange(LANE, dtype=jnp.float32)[None, :], (8, LANE))
    y = pl.pallas_call(k, out_shape=jax.ShapeDtypeStruct((8, LANE), jnp.float32))(x)
    v = int(np.asarray(y)[0, 0])
    # jnp.roll-style (y[i] = x[i - shift]) -> y[0,0] == 127 -> shift = -sigma.
    return -1 if v == LANE - 1 else 1


def pack_params(params, hw_in):
    """One-time packing: stacked per-layer weights (taps packed along K),
    border masks, decimation matrices and the static execution plan."""
    h, w = hw_in
    cfg = _encoder_config()

    plan, masks, decims = [], [], []
    mask_cache = {}
    w_blocks, b_cols = [], []
    conv_idx, k_max = 0, C_PACK

    for st in cfg:
        sp_in = _phys(h * w)
        if st["kind"] == "conv":
            kh, kw = st["ksize"]
            sh, sw = st["stride"]
            ph, pw = st["padding"]
            ho = (h + 2 * ph - kh) // sh + 1
            wo = (w + 2 * pw - kw) // sw + 1

            key = ("c", h, w, kh, kw, ph, pw)
            if key not in mask_cache:
                shifts, m = _conv_shifts_masks(h, w, kh, kw, ph, pw, sp_in)
                mask_cache[key] = (len(masks), shifts)
                masks.append(m)
            mi, shifts = mask_cache[key]

            wt = np.asarray(params["conv_w"][conv_idx])   # (kh,kw,cin,cout)
            bt = np.asarray(params["conv_b"][conv_idx])
            conv_idx += 1
            _, _, cin, cout = wt.shape
            assert cin <= C_PACK and cout <= C_PACK
            kdim = kh * kw * C_PACK
            k_max = max(k_max, kdim)
            weff = np.zeros((C_PACK, kdim), np.float32)
            wr = wt.reshape(kh * kw, cin, cout)
            for t in range(kh * kw):
                weff[:cout, t * C_PACK:t * C_PACK + cin] = wr[t].T
            bcol = np.zeros((C_PACK,), np.float32)
            bcol[:cout] = bt
            w_blocks.append(weff)
            b_cols.append(bcol)

            di = None
            if (sh, sw) != (1, 1) or (ho, wo) != (h, w):
                decims.append(_decim_matrix(h, w, ho, wo, sh, sw,
                                            sp_in, _phys(ho * wo)))
                di = len(decims) - 1
            plan.append(("conv", len(w_blocks) - 1, mi, shifts, kdim, di, sp_in))
            h, w = ho, wo
        else:
            kh, kw = st["window"]
            sh, sw = st["stride"]
            ho = (h - kh) // sh + 1
            wo = (w - kw) // sw + 1
            shifts = _pool_shifts(kh, kw, w)
            decims.append(_decim_matrix(h, w, ho, wo, sh, sw,
                                        sp_in, _phys(ho * wo)))
            plan.append(("pool", shifts, len(decims) - 1, sp_in))
            h, w = ho, wo

    # Stack encoder conv weights / biases (K padded to k_max with zeros).
    wenc = np.zeros((len(w_blocks), C_PACK, k_max), np.float32)
    for l, wb in enumerate(w_blocks):
        wenc[l, :, :wb.shape[1]] = wb
    benc = np.stack(b_cols, axis=1)                   # (32, n_conv)

    # 1x1 prediction conv.
    pw_ = np.asarray(params["pred_w"])
    pb_ = np.asarray(params["pred_b"])
    _, _, cin_p, ncls = pw_.shape
    assert cin_p <= C_PACK and ncls <= LANE
    cls_pad = _round_up(ncls, 16)
    wpred = np.zeros((cls_pad, C_PACK), np.float32)
    wpred[:ncls, :cin_p] = pw_.reshape(cin_p, ncls).T
    bpred = np.zeros((cls_pad, 1), np.float32)
    bpred[:ncls, 0] = pb_

    return dict(
        wenc=jnp.asarray(wenc, jnp.bfloat16),
        benc=jnp.asarray(benc, jnp.float32),
        wpred=jnp.asarray(wpred, jnp.bfloat16),
        bpred=jnp.asarray(bpred, jnp.float32),
        masks=[jnp.asarray(m, jnp.float32) for m in masks],
        decims=[jnp.asarray(d, jnp.bfloat16) for d in decims],
        plan=tuple(plan),
        k_max=k_max,
        cls_pad=cls_pad,
        num_classes=ncls,
        hw_in=hw_in,
        hw_out=(h, w),
        sp0=_phys(hw_in[0] * hw_in[1]),
        sp_out=_phys(h * w),
        roll_sign=_roll_sign(),
    )


def _const_spec(a):
    zeros = (0,) * a.ndim
    return pl.BlockSpec(tuple(a.shape), lambda bi, z=zeros: z)


# ------------------------------- forward passes ------------------------------

def ctc_decoder_forward(feature_nchw, packed):
    """Inference path of CTCDecoder.forward (train=False): softmax maps, NCHW."""
    b, cin, h, w = feature_nchw.shape
    assert (h, w) == packed["hw_in"]
    assert cin <= C_PACK
    s0, sp0 = h * w, packed["sp0"]

    # NCHW -> (B, 32, sp0) bf16: channels on sublanes, flat spatial on lanes.
    x = feature_nchw.reshape(b, cin, s0).astype(jnp.bfloat16)
    x = jnp.pad(x, ((0, 0), (0, C_PACK - cin), (0, sp0 - s0)))

    kernel = functools.partial(
        _fused_ctc_kernel,
        plan=packed["plan"],
        n_masks=len(packed["masks"]),
        num_classes=packed["num_classes"],
        roll_sign=packed["roll_sign"],
    )

    in_specs = [pl.BlockSpec((1, C_PACK, sp0), lambda bi: (bi, 0, 0))]
    for a in (packed["wenc"], packed["benc"], packed["wpred"], packed["bpred"],
              *packed["masks"], *packed["decims"]):
        in_specs.append(_const_spec(a))

    out = pl.pallas_call(
        kernel,
        out_shape=jax.ShapeDtypeStruct((b, packed["cls_pad"], packed["sp_out"]),
                                       jnp.float32),
        grid=(b,),
        in_specs=in_specs,
        out_specs=pl.BlockSpec((1, packed["cls_pad"], packed["sp_out"]),
                               lambda bi: (bi, 0, 0)),
        scratch_shapes=[pltpu.VMEM((packed["k_max"], sp0), jnp.bfloat16)],
        compiler_params=pltpu.CompilerParams(
            dimension_semantics=("parallel",)),
    )(x, packed["wenc"], packed["benc"], packed["wpred"], packed["bpred"],
      *packed["masks"], *packed["decims"])

    ho, wo = packed["hw_out"]
    nc = packed["num_classes"]
    probs = out[:, :nc, :ho * wo].reshape(b, nc, ho, wo)
    return probs


def ctc_decoder_reference(feature_nchw, params):
    """Pure-JAX reference using the same bf16-operand / f32-accumulate numerics."""
    cfg = _encoder_config()
    x = jnp.transpose(feature_nchw, (0, 2, 3, 1)).astype(jnp.float32)
    ci = 0
    for st in cfg:
        if st["kind"] == "conv":
            w = params["conv_w"][ci]
            b = params["conv_b"][ci]
            ci += 1
            ph, pw = st["padding"]
            x = lax.conv_general_dilated(
                x.astype(jnp.bfloat16), w.astype(jnp.bfloat16),
                window_strides=st["stride"],
                padding=[(ph, ph), (pw, pw)],
                dimension_numbers=("NHWC", "HWIO", "NHWC"),
                preferred_element_type=jnp.float32) + b
            x = jnp.maximum(x, 0.0)
        else:
            kh, kw = st["window"]
            sh, sw = st["stride"]
            x = lax.reduce_window(x, -jnp.inf, lax.max,
                                  (1, kh, kw, 1), (1, sh, sw, 1), "VALID")
    x = lax.conv_general_dilated(
        x.astype(jnp.bfloat16), params["pred_w"].astype(jnp.bfloat16),
        window_strides=(1, 1), padding=[(0, 0), (0, 0)],
        dimension_numbers=("NHWC", "HWIO", "NHWC"),
        preferred_element_type=jnp.float32) + params["pred_b"]
    x = jax.nn.softmax(x, axis=-1)
    return jnp.transpose(x, (0, 3, 1, 2))


# ------------------------------------ main -----------------------------------

if __name__ == "__main__":
    B, IN_CH, H, W = 2, 4, 16, 16
    INNER_CHANNELS = 32
    NUM_CLASSES = 37            # stand-in for len(DefaultCharset())

    key = jax.random.PRNGKey(0)
    params = init_params(key, IN_CH, INNER_CHANNELS, NUM_CLASSES)
    packed = pack_params(params, (H, W))
    feature = jax.random.normal(jax.random.fold_in(key, 123),
                                (B, IN_CH, H, W), jnp.float32)

    out = jax.block_until_ready(ctc_decoder_forward(feature, packed))
    ref = jax.block_until_ready(ctc_decoder_reference(feature, params))

    assert out.shape == (B, NUM_CLASSES, 1, W // 2), out.shape
    assert out.dtype == jnp.float32
    np.testing.assert_allclose(np.asarray(out), np.asarray(ref),
                               rtol=5e-3, atol=1e-5)
    print("KERNEL_OK")
</pallas_src>

<mosaic_0001>
module attributes {stable_mosaic.version = 11 : i64} {
  func.func @k(%arg0: memref<8x128xf32, #tpu.memory_space<vmem>>, %arg1: memref<8x128xf32, #tpu.memory_space<vmem>>) attributes {dimension_semantics = [], scalar_prefetch = 0 : i64, scratch_operands = 0 : i64, tpu.core_type = #tpu.core_type<tc>} {
    %c0 = arith.constant 0 : index
    %c0_0 = arith.constant 0 : index
    %0 = vector.load %arg0[%c0, %c0_0] : memref<8x128xf32, #tpu.memory_space<vmem>>, vector<8x128xf32>
    %c1_i32 = arith.constant 1 : i32
    %1 = tpu.dynamic_rotate %0 by %c1_i32 dim 1 : vector<8x128xf32>, i32 -> vector<8x128xf32>
    %c0_1 = arith.constant 0 : index
    %c0_2 = arith.constant 0 : index
    %2 = vector.load %arg1[%c0_1, %c0_2] : memref<8x128xf32, #tpu.memory_space<vmem>>, vector<8x128xf32>
    tpu.vector_store %arg1[%c0_1, %c0_2], %1 {strides = array<i32>} : memref<8x128xf32, #tpu.memory_space<vmem>>, vector<8x128xf32>,
    return
  }
}

</mosaic_0001>

<bundles_post_ra>
// kernel: tpu_custom_call.1
= control target key start
LH: loop header
LB: loop body
LE: loop exit
PB: predicated region body
PF: predicated region fallthrough
CT: control target
= control target key end

     0   :  { %6 = vsyncpa [#allocation3], 0  ;;  %s118_s0 = inlined_call_operand.hbm [shape: f32[8,128], index: 0, kind: input, shape index: {}]   ;;  %s119_s1 = inlined_call_operand.hbm [shape: f32[8,128], index: 1, kind: output, shape index: {}]  }
   0x1   :  { %7 = vsyncpa [#allocation4], 0  ;;  %s13_s8 = sshll.u32 %s118_s0, 4  ;;  %s99_s9 = smov [#allocation2]   ;;  %s14_s8 = int_to_ptr.hbm [resolvable:$true] %s13_s8 }
   0x2   :  { %s15_s10 = sshll.u32 %s99_s9, 4  ;;  %s16_s10 = int_to_ptr.vmem [resolvable:$true] %s15_s10 }
   0x3   :  { %18 = dma.hbm_to_vmem [thread:$0]  %s14_s8, 128, %s16_s10, [#allocation3]  }
   0x4   :  { %95 = dma.done.wait [#allocation3], 128  }
   0x5   :  { %96 = vsyncadd [#allocation3], 4294967168  ;;  %v23_v0 = vld [vmem:[#allocation2] sm:$0xff]  ;;  %s100_s11 = smov 1   ;;  %s101_s12 = smov [#allocation5]  }
   0x6   :  { %24 = vrot.lane.b32.xlu0 %v23_v0, %s100_s11  ;;  %s32_s13 = sshll.u32 %s101_s12, 4  ;;  %s34_s16 = sshll.u32 %s119_s1, 4  ;;  %s33_s13 = int_to_ptr.vmem [resolvable:$true] %s32_s13  ;;  %s35_s16 = int_to_ptr.hbm [resolvable:$true] %s34_s16 }
  0x78   :  { %v25_v1 = vpop.permute.xlu0 %24 }
  0x79   :  { %26 = vst [vmem:[#allocation5] sm:$0xff] %v25_v1 }
  0x7a   :  { %37 = dma.vmem_to_hbm [thread:$0]  %s33_s13, 128, %s35_s16, [#allocation4]  }
  0x7b   :  { %97 = dma.done.wait [#allocation4], 128  }
  0x7c   :  { %98 = vsyncadd [#allocation4], 4294967168 }
  0x7d   :  { %42 = vsyncpa [#allocation3], 1 }
  0x7e   :  { %43 = vsyncpa [#allocation4], 1 }

</bundles_post_ra>
